<compile_context>
chip_gen: v7x
topology: tpu7x:2x2x1
jax: 0.10.0
libtpu: 0.0.40
codegen_flags: <defaults>
</compile_context>

<pallas_src>
import functools

import jax
import jax.numpy as jnp
from jax.experimental import pallas as pl
from jax.experimental.pallas import tpu as pltpu


# ---------------------------------------------------------------------------
# Tile selection: lane-dense output tiles (multiples of 128 columns) that
# divide E_out exactly whenever possible, so no ragged boundary block exists.
# ---------------------------------------------------------------------------
_TILE_CANDIDATES = (32768, 16384, 8192, 4096, 2048, 1024, 512, 256, 128)
_SINGLE_BLOCK_MAX_COLS = 128 * 1024  # <= ~4 MiB per (8-sublane-padded) buffer
_FALLBACK_TILE_CAP = 1024            # bounds narrow-lane VMEM inflation in fallback


def _choose_primary_tile(e_out: int) -> int:
    for t in _TILE_CANDIDATES:
        if e_out % t == 0:
            return t
    if e_out <= _SINGLE_BLOCK_MAX_COLS:
        return e_out  # one full-width block (legal: equals the full array dim)
    # Rare: huge E_out not divisible by 128 -> ragged last block; Pallas clips
    # out-of-bounds stores on the boundary block.
    return 1024


def _choose_fallback_tile(e_out: int) -> int:
    for t in _TILE_CANDIDATES:
        if t <= _FALLBACK_TILE_CAP and e_out % t == 0:
            return t
    if e_out <= _FALLBACK_TILE_CAP:
        return e_out
    return 1024


# ---------------------------------------------------------------------------
# Primary path: dilation folded into the BlockSpec (strided DMA); kernel body
# is a pure lane-dense copy.
# ---------------------------------------------------------------------------
def _copy_kernel(x_ref, o_ref):
    # x_ref, o_ref: (2, TILE) int32 in VMEM. The strided gather (every
    # dilation-th column) was already performed by the input DMA.
    o_ref[...] = x_ref[...]


def _dilated_strided_dma(edge_index, dilation, e_out, tile):
    two = edge_index.shape[0]
    # Free row-major reshape: (2, E) -> (2, E_out, dilation); element
    # [r, j, 0] == edge_index[r, j * dilation].
    x3 = edge_index.reshape(two, e_out, dilation)
    return pl.pallas_call(
        _copy_kernel,
        out_shape=jax.ShapeDtypeStruct((two, e_out), edge_index.dtype),
        grid=(pl.cdiv(e_out, tile),),
        # Squeezed (None) minor dim pinned at element 0 -> the DMA fetches
        # only the selected (every dilation-th) columns into a dense VMEM
        # buffer; the kernel then does a plain lane-dense copy.
        in_specs=[pl.BlockSpec((two, tile, None), lambda i: (0, i, 0))],
        out_specs=pl.BlockSpec((two, tile), lambda i: (0, i)),
        compiler_params=pltpu.CompilerParams(dimension_semantics=("parallel",)),
    )(x3)


# ---------------------------------------------------------------------------
# Fallback path (previously validated): transpose so the dilated axis is the
# sublane axis, sublane-strided ref load in VMEM, transpose back. Tiled +
# "parallel"; tile capped because (N, 2) blocks pad to 128 lanes in VMEM.
# ---------------------------------------------------------------------------
def _dilated_sublane_kernel(x_ref, o_ref, *, dilation, tile):
    # x_ref: (TILE*dilation, 2); o_ref: (TILE, 2). Sublane-strided load.
    o_ref[...] = x_ref[pl.ds(0, tile, stride=dilation), :]


def _dilated_transposed(edge_index, dilation, e_out, tile):
    two = edge_index.shape[0]
    xt = edge_index.T  # (E, 2): dilated axis on sublanes
    kernel = functools.partial(_dilated_sublane_kernel, dilation=dilation, tile=tile)
    out_t = pl.pallas_call(
        kernel,
        out_shape=jax.ShapeDtypeStruct((e_out, two), edge_index.dtype),
        grid=(pl.cdiv(e_out, tile),),
        in_specs=[pl.BlockSpec((tile * dilation, two), lambda i: (i, 0))],
        out_specs=pl.BlockSpec((tile, two), lambda i: (i, 0)),
        compiler_params=pltpu.CompilerParams(dimension_semantics=("parallel",)),
    )(xt)
    return out_t.T


# ---------------------------------------------------------------------------
# One-time capability probe for the squeezed-minor-dim BlockSpec. Uses a
# representative configuration (dilation=3, multi-block grid) and checks the
# numerical result, so a silently-wrong lowering also triggers the fallback.
# ---------------------------------------------------------------------------
_SQUEEZED_OK = None


def _squeezed_minor_supported() -> bool:
    global _SQUEEZED_OK
    if _SQUEEZED_OK is None:
        try:
            d, e_out, t = 3, 256, 128
            x = jnp.arange(2 * e_out * d, dtype=jnp.int32).reshape(2, e_out, d)
            got = pl.pallas_call(
                _copy_kernel,
                out_shape=jax.ShapeDtypeStruct((2, e_out), jnp.int32),
                grid=(e_out // t,),
                in_specs=[pl.BlockSpec((2, t, None), lambda i: (0, i, 0))],
                out_specs=pl.BlockSpec((2, t), lambda i: (0, i)),
            )(x)
            got = jax.block_until_ready(got)
            _SQUEEZED_OK = bool(jnp.array_equal(got, x[:, :, 0]))
        except Exception:
            _SQUEEZED_OK = False
    return _SQUEEZED_OK


# ---------------------------------------------------------------------------
# Public wrapper
# ---------------------------------------------------------------------------
def dilated_edge_index(edge_index: jax.Array, dilation: int) -> jax.Array:
    """Equivalent of Dilated(k, dilation)(edge_index) (deterministic path).

    edge_index: (2, E). Returns (2, ceil(E / dilation)), same dtype.
    """
    assert edge_index.ndim == 2 and edge_index.shape[0] == 2
    d = int(dilation)
    if d <= 1:
        # edge_index[:, ::1] is the identity: no data movement needed.
        return edge_index

    e = edge_index.shape[1]
    e_out = -(-e // d)  # ceil, matches python slicing ::dilation
    if e % d != 0:
        # Pad trailing columns so the (2, E_out, dilation) view is exact.
        # Padded columns are never selected ((E_out-1)*dilation < E).
        edge_index = jnp.pad(edge_index, ((0, 0), (0, e_out * d - e)))

    if _squeezed_minor_supported():
        try:
            tile = _choose_primary_tile(e_out)
            return _dilated_strided_dma(edge_index, d, e_out, tile)
        except Exception:
            pass  # extremely unlikely; use the proven path below
    tile = _choose_fallback_tile(e_out)
    return _dilated_transposed(edge_index, d, e_out, tile)


class Dilated:
    """Find dilated neighbor from neighbor list (JAX/Pallas version)."""

    def __init__(self, k=9, dilation=1, stochastic=False, epsilon=0.0):
        self.k = k
        self.dilation = dilation
        self.stochastic = stochastic
        self.epsilon = epsilon

    def __call__(self, edge_index):
        # TODO(synk): stochastic+training random-permutation branch not ported
        # (eval-time behavior is the deterministic strided slice below).
        return dilated_edge_index(edge_index, self.dilation)


if __name__ == "__main__":
    key = jax.random.PRNGKey(0)

    def check(batch, num_points, k, dilation, subkey):
        E = batch * num_points * k * dilation
        edge_index = jax.random.randint(
            subkey, (2, E), 0, batch * num_points, dtype=jnp.int32
        )
        out = Dilated(k=k, dilation=dilation)(edge_index)
        out = jax.block_until_ready(out)
        ref = edge_index[:, ::dilation]
        assert out.shape == ref.shape, (dilation, out.shape, ref.shape)
        assert out.dtype == ref.dtype, (dilation, out.dtype, ref.dtype)
        assert bool(jnp.all(out == ref)), f"mismatch vs reference (dilation={dilation})"

    k1, k2, k3, k4, k5 = jax.random.split(key, 5)
    check(batch=2, num_points=8, k=9, dilation=2, subkey=k1)     # small, single full-width block
    check(batch=2, num_points=8, k=9, dilation=3, subkey=k2)     # non-power-of-two dilation
    check(batch=2, num_points=8, k=9, dilation=1, subkey=k3)     # identity path
    check(batch=2, num_points=128, k=9, dilation=2, subkey=k4)   # multi-tile grid (E_out=2304)
    check(batch=2, num_points=64, k=9, dilation=4, subkey=k5)    # larger dilation, 128-wide tiles
    print("KERNEL_OK")
</pallas_src>

<mosaic_0001>
module attributes {stable_mosaic.version = 11 : i64} {
  func.func @_dilated_sublane_kernel(%arg0: i32, %arg1: memref<288x2xi32, #tpu.memory_space<vmem>>, %arg2: memref<144x2xi32, #tpu.memory_space<vmem>>) attributes {dimension_semantics = [#tpu.dimension_semantics<parallel>], iteration_bounds = array<i64: 1>, scalar_prefetch = 0 : i64, scratch_operands = 0 : i64, tpu.core_type = #tpu.core_type<tc>, window_params = [{transform_indices = @transform_0, window_bounds = array<i64: 288, 2>}, {transform_indices = @transform_1, window_bounds = array<i64: 144, 2>}]} {
    %c0 = arith.constant 0 : index
    %c0_0 = arith.constant 0 : index
    %0 = tpu.strided_load %arg1[%c0, %c0_0] {strides = array<i32: 2, 1>} : memref<288x2xi32, #tpu.memory_space<vmem>>, vector<144x2xi32>
    %c0_1 = arith.constant 0 : index
    %c0_2 = arith.constant 0 : index
    %1 = vector.load %arg2[%c0_1, %c0_2] : memref<144x2xi32, #tpu.memory_space<vmem>>, vector<144x2xi32>
    tpu.vector_store %arg2[%c0_1, %c0_2], %0 {strides = array<i32>} : memref<144x2xi32, #tpu.memory_space<vmem>>, vector<144x2xi32>,
    return
  }
  func.func @transform_0(%arg0: i32) -> (i32, i32) {
    %c0_i32 = arith.constant 0 : i32
    %c0_i32_0 = arith.constant 0 : i32
    return %arg0, %c0_i32 : i32, i32
  }
  func.func @transform_1(%arg0: i32) -> (i32, i32) {
    %c0_i32 = arith.constant 0 : i32
    %c0_i32_0 = arith.constant 0 : i32
    return %arg0, %c0_i32 : i32, i32
  }
}

</mosaic_0001>

<bundles_post_ra>
// kernel: tpu_custom_call.1
= control target key start
LH: loop header
LB: loop body
LE: loop exit
PB: predicated region body
PF: predicated region fallthrough
CT: control target
= control target key end

     0   :  { %vm43_vm0 = vcmask 15360   ;;  %s219_s0 = inlined_call_operand.vmem [shape: s32[288,2], index: 0, kind: input, shape index: {}]   ;;  %s220_s1 = inlined_call_operand.vmem [shape: s32[144,2], index: 1, kind: output, shape index: {}]  }
   0x1   :  { %v8_v0 = vld [vmem:[%s219_s0] ss:$2 sm:$0xff]  ;;  %v66_v1 = vld [vmem:[%s219_s0 + $0x10] ss:$2 sm:$0xff] }
   0x2   :  { %v67_v2 = vld [vmem:[%s219_s0 + $0x20] ss:$2 sm:$0xff]  ;;  %44 = vst.msk [vmem:[%s220_s1] sm:$0xff] %vm43_vm0, %v8_v0  ;;  %45 = vst.msk [vmem:[%s220_s1 + $0x8] sm:$0xff] %vm43_vm0, %v66_v1  ;;  %v68_v3 = vld [vmem:[%s219_s0 + $0x30] ss:$2 sm:$0xff] }
   0x3   :  { %46 = vst.msk [vmem:[%s220_s1 + $0x10] sm:$0xff] %vm43_vm0, %v67_v2  ;;  %v69_v4 = vld [vmem:[%s219_s0 + $0x40] ss:$2 sm:$0xff]  ;;  %v70_v5 = vld [vmem:[%s219_s0 + $0x50] ss:$2 sm:$0xff]  ;;  %47 = vst.msk [vmem:[%s220_s1 + $0x18] sm:$0xff] %vm43_vm0, %v68_v3 }
   0x4   :  { %48 = vst.msk [vmem:[%s220_s1 + $0x20] sm:$0xff] %vm43_vm0, %v69_v4  ;;  %49 = vst.msk [vmem:[%s220_s1 + $0x28] sm:$0xff] %vm43_vm0, %v70_v5  ;;  %v71_v6 = vld [vmem:[%s219_s0 + $0x60] ss:$2 sm:$0xff]  ;;  %v72_v7 = vld [vmem:[%s219_s0 + $0x70] ss:$2 sm:$0xff] }
   0x5   :  { %v73_v8 = vld [vmem:[%s219_s0 + $0x80] ss:$2 sm:$0xff]  ;;  %50 = vst.msk [vmem:[%s220_s1 + $0x30] sm:$0xff] %vm43_vm0, %v71_v6  ;;  %51 = vst.msk [vmem:[%s220_s1 + $0x38] sm:$0xff] %vm43_vm0, %v72_v7  ;;  %v74_v9 = vld [vmem:[%s219_s0 + $0x90] ss:$2 sm:$0xff] }
   0x6   :  { %52 = vst.msk [vmem:[%s220_s1 + $0x40] sm:$0xff] %vm43_vm0, %v73_v8  ;;  %v75_v10 = vld [vmem:[%s219_s0 + $0xa0] ss:$2 sm:$0xff]  ;;  %v76_v11 = vld [vmem:[%s219_s0 + $0xb0] ss:$2 sm:$0xff]  ;;  %53 = vst.msk [vmem:[%s220_s1 + $0x48] sm:$0xff] %vm43_vm0, %v74_v9 }
   0x7   :  { %54 = vst.msk [vmem:[%s220_s1 + $0x50] sm:$0xff] %vm43_vm0, %v75_v10  ;;  %55 = vst.msk [vmem:[%s220_s1 + $0x58] sm:$0xff] %vm43_vm0, %v76_v11  ;;  %v77_v12 = vld [vmem:[%s219_s0 + $0xc0] ss:$2 sm:$0xff]  ;;  %v78_v13 = vld [vmem:[%s219_s0 + $0xd0] ss:$2 sm:$0xff] }
   0x8   :  { %v79_v14 = vld [vmem:[%s219_s0 + $0xe0] ss:$2 sm:$0xff]  ;;  %56 = vst.msk [vmem:[%s220_s1 + $0x60] sm:$0xff] %vm43_vm0, %v77_v12  ;;  %57 = vst.msk [vmem:[%s220_s1 + $0x68] sm:$0xff] %vm43_vm0, %v78_v13  ;;  %v80_v15 = vld [vmem:[%s219_s0 + $0xf0] ss:$2 sm:$0xff] }
   0x9   :  { %58 = vst.msk [vmem:[%s220_s1 + $0x70] sm:$0xff] %vm43_vm0, %v79_v14  ;;  %v81_v16 = vld [vmem:[%s219_s0 + $0x100] ss:$2 sm:$0xff]  ;;  %v82_v17 = vld [vmem:[%s219_s0 + $0x110] ss:$2 sm:$0xff]  ;;  %59 = vst.msk [vmem:[%s220_s1 + $0x78] sm:$0xff] %vm43_vm0, %v80_v15 }
   0xa   :  { %60 = vst.msk [vmem:[%s220_s1 + $0x80] sm:$0xff] %vm43_vm0, %v81_v16  ;;  %61 = vst.msk [vmem:[%s220_s1 + $0x88] sm:$0xff] %vm43_vm0, %v82_v17 }

</bundles_post_ra>
